<compile_context>
chip_gen: v5e
topology: v5e:2x2
jax: 0.10.0
libtpu: 0.0.40
codegen_flags: <defaults>
</compile_context>

<pallas_src>
import jax
import jax.numpy as jnp
from jax.experimental import pallas as pl
from jax.experimental.pallas import tpu as pltpu


_TILE_BYTE_BUDGET = 4 * 1024 * 1024    # per-tile; x4 buffers (in+out double-buffered) = 16 MiB
_VMEM_LIMIT_BYTES = 32 * 1024 * 1024   # safe on v5e/v6e (128 MiB phys) and v7x (64 MiB phys)


def _copy_kernel(x_ref, o_ref):
    # Straight VMEM tile copy.
    o_ref[...] = x_ref[...]


def identity(x):
    """True Identity forward (matches nn.Identity): zero bytes moved, no kernel."""
    return x


def _as_lane_dense_2d(x):
    """Reshape to a (rows, C) slab with C a large multiple of 128 when possible."""
    total = x.size
    if x.ndim == 0:
        return x.reshape(1, 1)
    for c in (8192, 4096, 2048, 1024, 512, 256, 128):
        if total >= c and total % c == 0:
            return x.reshape(total // c, c)
    # Fallback: keep the original trailing dim (full-extent last block dim is legal).
    if x.ndim == 1:
        return x.reshape(1, -1)
    return x.reshape(-1, x.shape[-1])


def identity_pallas(x):
    """Identity implemented as an aliased Pallas copy.

    NOTE: prefer `identity(x)` in real models -- an identity needs no HBM traffic.
    This path exists to exercise the Pallas kernel with the cheapest possible copy.
    """
    orig_shape = x.shape
    x2d = _as_lane_dense_2d(x)
    M, N = x2d.shape
    itemsize = x2d.dtype.itemsize

    # Byte-budgeted row tiling: biggest tile whose 4 resident buffers stay well
    # under every generation's scoped-VMEM limit; full lane width per block.
    tm = max(1, _TILE_BYTE_BUDGET // (N * itemsize))
    if tm >= M:
        tm = M                        # full extent is always a legal block dim
    else:
        tm = max(8, (tm // 8) * 8)    # keep sublane-aligned tiles

    grid = (pl.cdiv(M, tm),)
    nbytes = x2d.size * itemsize

    out = pl.pallas_call(
        _copy_kernel,
        out_shape=jax.ShapeDtypeStruct((M, N), x2d.dtype),
        grid_spec=pltpu.PrefetchScalarGridSpec(
            num_scalar_prefetch=0,
            grid=grid,
            in_specs=[pl.BlockSpec((tm, N), lambda i: (i, 0))],
            out_specs=pl.BlockSpec((tm, N), lambda i: (i, 0)),
        ),
        compiler_params=pltpu.CompilerParams(
            dimension_semantics=("parallel",),      # v7x: shard rows across both TCs
            vmem_limit_bytes=_VMEM_LIMIT_BYTES,
        ),
        input_output_aliases={0: 0},                # donate input HBM buffer to output
        cost_estimate=pl.CostEstimate(
            flops=0, transcendentals=0, bytes_accessed=2 * nbytes),
    )(x2d)

    return out.reshape(orig_shape)


if __name__ == "__main__":
    key = jax.random.PRNGKey(0)
    # Small NCHW-style input consistent with typical use of this module.
    x = jax.random.normal(key, (2, 4, 16, 16), dtype=jnp.float32)

    # Exercise the Pallas kernel path.
    y = identity_pallas(x)
    y = jax.block_until_ready(y)
    assert y.shape == x.shape and y.dtype == x.dtype
    assert bool(jnp.all(y == x))

    # Zero-cost path (what nn.Identity semantically is).
    z = identity(x)
    assert z is x

    print("KERNEL_OK")
</pallas_src>

<mosaic_0001>
module attributes {stable_mosaic.version = 11 : i64} {
  func.func @_copy_kernel(%arg0: i32, %arg1: memref<1x2048xf32, #tpu.memory_space<vmem>>, %arg2: memref<1x2048xf32, #tpu.memory_space<vmem>>) attributes {dimension_semantics = [#tpu.dimension_semantics<parallel>], iteration_bounds = array<i64: 1>, scalar_prefetch = 0 : i64, scratch_operands = 0 : i64, tpu.core_type = #tpu.core_type<tc>, window_params = [{transform_indices = @transform_0, window_bounds = array<i64: 1, 2048>}, {transform_indices = @transform_1, window_bounds = array<i64: 1, 2048>}]} {
    %c0 = arith.constant 0 : index
    %c0_0 = arith.constant 0 : index
    %0 = vector.load %arg1[%c0, %c0_0] : memref<1x2048xf32, #tpu.memory_space<vmem>>, vector<1x2048xf32>
    %c0_1 = arith.constant 0 : index
    %c0_2 = arith.constant 0 : index
    %1 = vector.load %arg2[%c0_1, %c0_2] : memref<1x2048xf32, #tpu.memory_space<vmem>>, vector<1x2048xf32>
    tpu.vector_store %arg2[%c0_1, %c0_2], %0 {strides = array<i32>} : memref<1x2048xf32, #tpu.memory_space<vmem>>, vector<1x2048xf32>,
    return
  }
  func.func @transform_0(%arg0: i32) -> (i32, i32) {
    %c0_i32 = arith.constant 0 : i32
    %c0_i32_0 = arith.constant 0 : i32
    return %arg0, %c0_i32 : i32, i32
  }
  func.func @transform_1(%arg0: i32) -> (i32, i32) {
    %c0_i32 = arith.constant 0 : i32
    %c0_i32_0 = arith.constant 0 : i32
    return %arg0, %c0_i32 : i32, i32
  }
}

</mosaic_0001>

<bundles_post_ra>
// kernel: tpu_custom_call.1
= control target key start
LH: loop header
LB: loop body
LE: loop exit
PB: predicated region body
PF: predicated region fallthrough
CT: control target
= control target key end

     0   :  { %6 = vsyncpa [#allocation3], 0  ;;  %s116_s0 = inlined_call_operand.hbm [shape: f32[1,2048], index: 0, kind: input, shape index: {}, may-alias: {0,1}]   ;;  %s117_s1 = inlined_call_operand.hbm [shape: f32[1,2048], index: 1, kind: output, shape index: {}, may-alias: {0,1}]  }
   0x1   :  { %7 = vsyncpa [#allocation4], 0  ;;  %s13_s8 = sshll.u32 %s116_s0, 4  ;;  %s98_s9 = smov [#allocation2]   ;;  %s14_s8 = int_to_ptr.hbm [resolvable:$true] %s13_s8 }
   0x2   :  { %s15_s10 = sshll.u32 %s98_s9, 4  ;;  %s16_s10 = int_to_ptr.vmem [resolvable:$true] %s15_s10 }
   0x3   :  { %18 = dma.hbm_to_vmem [thread:$0]  %s14_s8, 256, %s16_s10, [#allocation3]  }
   0x4   :  { %94 = dma.done.wait [#allocation3], 256  }
   0x5   :  { %95 = vsyncadd [#allocation3], 4294967040  ;;  %s99_s11 = smov [#allocation5]   ;;  %s34_s15 = sshll.u32 %s117_s1, 4  ;;  %v23_v0 = vld [vmem:[#allocation2] sm:$0xff]  ;;  %v24_v1 = vld [vmem:[#allocation2 + $0x8] sm:$0xff]  ;;  %s35_s15 = int_to_ptr.hbm [resolvable:$true] %s34_s15 }
   0x6   :  { %s32_s12 = sshll.u32 %s99_s11, 4  ;;  %25 = vst [vmem:[#allocation5] sm:$0xff] %v23_v0  ;;  %s33_s12 = int_to_ptr.vmem [resolvable:$true] %s32_s12 }
   0x7   :  { %26 = vst [vmem:[#allocation5 + $0x8] sm:$0xff] %v24_v1 }
   0x8   :  { %37 = dma.vmem_to_hbm [thread:$0]  %s33_s12, 256, %s35_s15, [#allocation4]  }
   0x9   :  { %96 = dma.done.wait [#allocation4], 256  }
   0xa   :  { %97 = vsyncadd [#allocation4], 4294967040 }
   0xb   :  { %42 = vsyncpa [#allocation3], 1 }
   0xc   :  { %43 = vsyncpa [#allocation4], 1 }

</bundles_post_ra>
